<compile_context>
chip_gen: v7x
topology: tpu7x:2x2x1
jax: 0.10.0
libtpu: 0.0.40
codegen_flags: <defaults>
</compile_context>

<pallas_src>
import jax
import jax.numpy as jnp
import numpy as np
from jax.experimental import pallas as pl
from jax.experimental.pallas import tpu as pltpu


# --------------------------- kernel 1: conv block ---------------------------
def _conv_block_kernel(ec_ref, w1_ref, b1_ref, w2_ref, b2_ref,
                       ex2_ref, psum_ref, t_scr):
    """One (batch, row-tile) step: conv1(1x1,2C->C)+BN1+ReLU, conv2(3x3)+BN2,
    residual add with c2e; emits [equi | x] tiles and SE pool partial sums."""
    PH, C2 = ec_ref.shape                 # PH = (TH + 2) * W  (halo'd pixels)
    C = C2 // 2
    P = ex2_ref.shape[0]                  # P  = TH * W        (central pixels)
    W = (PH - P) // 2                     # image width (columns per row)
    SLACK = (t_scr.shape[0] - PH) // 2    # zero slack rows around t (>= 1)

    # ---- res_conv1 (1x1, 2C->C) + folded BN1 + ReLU over the halo'd rows ----
    t = jnp.dot(ec_ref[...], w1_ref[...], preferred_element_type=jnp.float32)
    t = jnp.maximum(t + b1_ref[...], 0.0)                      # (PH, C) f32

    # ---- stage t into scratch (slack keeps +/-1 column shifts in-bounds) ----
    t_scr[0:SLACK, :] = jnp.zeros((SLACK, C), t_scr.dtype)
    t_scr[SLACK + PH:2 * SLACK + PH, :] = jnp.zeros((SLACK, C), t_scr.dtype)
    t_scr[SLACK:SLACK + PH, :] = t

    # conv2's "SAME" zero padding applies to t (i.e. AFTER conv1/bn1/relu):
    # zero the halo row that falls outside the image on the first/last tile.
    @pl.when(pl.program_id(1) == 0)
    def _():
        t_scr[SLACK:SLACK + W, :] = jnp.zeros((W, C), t_scr.dtype)

    @pl.when(pl.program_id(1) == pl.num_programs(1) - 1)
    def _():
        t_scr[SLACK + PH - W:SLACK + PH, :] = jnp.zeros((W, C), t_scr.dtype)

    # ---- column-shifted views (+/-1 flattened pixel == +/-1 column); the
    #      entry that wrapped across a row boundary is masked to zero.
    # TODO(synk): pltpu.roll along the sublane axis would avoid the two
    #             unaligned (+/-1) slices entirely.
    col = jax.lax.broadcasted_iota(jnp.int32, (PH, C), 0) % W
    t_c = t_scr[SLACK:SLACK + PH, :].astype(jnp.bfloat16)
    t_m1 = jnp.where(col != 0, t_scr[SLACK - 1:SLACK - 1 + PH, :],
                     0.0).astype(jnp.bfloat16)
    t_p1 = jnp.where(col != W - 1, t_scr[SLACK + 1:SLACK + 1 + PH, :],
                     0.0).astype(jnp.bfloat16)

    # ---- res_conv2 (3x3, pad=1) + folded BN2: 9 bf16 MXU matmuls; the row
    #      shifts a*W are multiples of 8 (W % 8 == 0) -> aligned slices.
    acc = jnp.zeros((P, C), jnp.float32)
    for a in range(3):
        r0 = a * W
        acc += jnp.dot(t_m1[r0:r0 + P], w2_ref[a, 0],
                       preferred_element_type=jnp.float32)
        acc += jnp.dot(t_c[r0:r0 + P], w2_ref[a, 1],
                       preferred_element_type=jnp.float32)
        acc += jnp.dot(t_p1[r0:r0 + P], w2_ref[a, 2],
                       preferred_element_type=jnp.float32)
    shortcut = acc + b2_ref[...]                                # (P, C) f32

    # ---- x = c2e + shortcut; emit [equi | x] so kernel 2 is one K=2C matmul.
    equi_c = ec_ref[W:W + P, 0:C]                               # central rows
    c2e_c = ec_ref[W:W + P, C:C2]
    x2 = c2e_c.astype(jnp.float32) + shortcut
    ex2_ref[:, 0:C] = equi_c
    ex2_ref[:, C:C2] = x2.astype(ex2_ref.dtype)

    # ---- SE global-average-pool partial sums (reduced across tiles in JAX).
    psum_ref[0:1, 0:C] = jnp.sum(equi_c.astype(jnp.float32), axis=0,
                                 keepdims=True)
    psum_ref[0:1, C:C2] = jnp.sum(x2, axis=0, keepdims=True)


# ------------------- kernel 2: SE-scaled final 1x1 conv ---------------------
def _se_final_kernel(ex2_ref, wf_ref, out_ref):
    """relu(([equi | x] * SE-scale) @ conv_w); the per-batch SE scale is
    pre-folded into wf_ref -> a single K=2C MXU matmul per tile."""
    out = jnp.dot(ex2_ref[...], wf_ref[...],
                  preferred_element_type=jnp.float32)
    out_ref[...] = jnp.maximum(out, 0.0)


# -------------------------------- wrapper -----------------------------------
def _pick_row_tile(H, W, C):
    """Largest divisor of H keeping the per-step VMEM footprint small."""
    budget_rows = max(1, (2 * 1024 * 1024) // max(1, W * C * 4))
    th = 1
    for d in range(1, H + 1):
        if H % d == 0 and d <= budget_rows:
            th = d
    return th


def cee_layer_pallas(equi_nchw, c2e_nchw, params, row_tile=None):
    B, C, H, W = equi_nchw.shape
    assert W % 8 == 0, "W must be a multiple of 8 (sublane tiling)"
    TH = _pick_row_tile(H, W, C) if row_tile is None else row_tile
    assert H % TH == 0, "row_tile must divide H"
    nR = H // TH
    P, PH = TH * W, (TH + 2) * W
    eps = 1e-5

    equi = jnp.transpose(equi_nchw, (0, 2, 3, 1)).astype(jnp.float32)  # NHWC
    c2e = jnp.transpose(c2e_nchw, (0, 2, 3, 1)).astype(jnp.float32)

    # ---- fold BN1 / BN2 (eval mode) into conv weights; biases stay f32 ----
    s1 = params['bn1_gamma'] / jnp.sqrt(params['bn1_var'] + eps)
    w1 = (params['conv1_w'][:, :, 0, 0] * s1[:, None]).T.astype(jnp.bfloat16)
    b1 = (params['bn1_beta'] - params['bn1_mean'] * s1)[None, :]       # (1, C)
    s2 = params['bn2_gamma'] / jnp.sqrt(params['bn2_var'] + eps)
    w2 = jnp.transpose(params['conv2_w'] * s2[:, None, None, None],
                       (2, 3, 1, 0)).astype(jnp.bfloat16)              # (3,3,Ci,Co)
    b2 = (params['bn2_beta'] - params['bn2_mean'] * s2)[None, :]       # (1, C)

    # ---- kernel-1 input: [equi | c2e] row tiles with a 1-row halo (zero rows
    #      at the image top/bottom), flattened to (pixels, 2C), bf16.
    # TODO(synk): a pl.Element-offset index_map could read the halo straight
    #             from the un-windowed array and avoid this HBM copy.
    ec = jnp.concatenate([equi, c2e], axis=-1).astype(jnp.bfloat16)    # (B,H,W,2C)
    ec_pad = jnp.pad(ec, ((0, 0), (1, 1), (0, 0), (0, 0)))
    ridx = jnp.arange(nR)[:, None] * TH + jnp.arange(TH + 2)[None, :]
    ec_win = ec_pad[:, ridx].reshape(B, nR, PH, 2 * C)

    cparams = pltpu.CompilerParams(
        dimension_semantics=("parallel", "parallel"),   # megacore on v7x
        vmem_limit_bytes=32 * 1024 * 1024)

    ex2, psum = pl.pallas_call(
        _conv_block_kernel,
        out_shape=(jax.ShapeDtypeStruct((B, nR, P, 2 * C), jnp.bfloat16),
                   jax.ShapeDtypeStruct((B, nR, 1, 2 * C), jnp.float32)),
        grid_spec=pltpu.PrefetchScalarGridSpec(
            num_scalar_prefetch=0,
            grid=(B, nR),
            in_specs=[pl.BlockSpec((None, None, PH, 2 * C),
                                   lambda b, r: (b, r, 0, 0)),
                      pl.BlockSpec((2 * C, C), lambda b, r: (0, 0)),
                      pl.BlockSpec((1, C), lambda b, r: (0, 0)),
                      pl.BlockSpec((3, 3, C, C), lambda b, r: (0, 0, 0, 0)),
                      pl.BlockSpec((1, C), lambda b, r: (0, 0))],
            out_specs=[pl.BlockSpec((None, None, P, 2 * C),
                                    lambda b, r: (b, r, 0, 0)),
                       pl.BlockSpec((None, None, 1, 2 * C),
                                    lambda b, r: (b, r, 0, 0))],
            scratch_shapes=[pltpu.VMEM((PH + 16, C), jnp.float32)]),
        compiler_params=cparams,
    )(ec_win, w1, b1, w2, b2)

    # ---- SE squeeze-excite on the pooled means: tiny (B, 2C) MLP in plain
    #      f32 JAX; fold its per-batch sigmoid scale into the final conv.
    means = psum.sum(axis=1).reshape(B, 2 * C) / float(H * W)
    y = jax.nn.relu(means @ params['se_fc1_w'].T)
    scale = jax.nn.sigmoid(y @ params['se_fc2_w'].T)                   # (B, 2C)
    wf = params['conv_w'][:, :, 0, 0].T                                # (2C, C)
    wf_b = (wf[None, :, :] * scale[:, :, None]).astype(jnp.bfloat16)   # (B,2C,C)

    out_tiles = pl.pallas_call(
        _se_final_kernel,
        out_shape=jax.ShapeDtypeStruct((B, nR, P, C), jnp.float32),
        grid_spec=pltpu.PrefetchScalarGridSpec(
            num_scalar_prefetch=0,
            grid=(B, nR),
            in_specs=[pl.BlockSpec((None, None, P, 2 * C),
                                   lambda b, r: (b, r, 0, 0)),
                      pl.BlockSpec((None, 2 * C, C), lambda b, r: (b, 0, 0))],
            out_specs=pl.BlockSpec((None, None, P, C),
                                   lambda b, r: (b, r, 0, 0))),
        compiler_params=cparams,
    )(ex2, wf_b)

    out = out_tiles.reshape(B, H, W, C)
    return jnp.transpose(out, (0, 3, 1, 2))                            # NCHW


# ------------------------- pure-JAX reference -------------------------------
def cee_layer_ref(equi, c2e, params):
    eps = 1e-5

    def conv(x, w, pad):
        return jax.lax.conv_general_dilated(
            x, w, (1, 1), pad, dimension_numbers=('NCHW', 'OIHW', 'NCHW'))

    def bn(x, g, b, m, v):
        return ((x - m[None, :, None, None])
                / jnp.sqrt(v[None, :, None, None] + eps)
                * g[None, :, None, None] + b[None, :, None, None])

    x = jnp.concatenate([equi, c2e], axis=1)
    x = jax.nn.relu(bn(conv(x, params['conv1_w'], 'VALID'),
                       params['bn1_gamma'], params['bn1_beta'],
                       params['bn1_mean'], params['bn1_var']))
    shortcut = bn(conv(x, params['conv2_w'], 'SAME'),
                  params['bn2_gamma'], params['bn2_beta'],
                  params['bn2_mean'], params['bn2_var'])
    x = c2e + shortcut
    x = jnp.concatenate([equi, x], axis=1)
    y = jnp.mean(x, axis=(2, 3))
    y = jax.nn.relu(y @ params['se_fc1_w'].T)
    y = jax.nn.sigmoid(y @ params['se_fc2_w'].T)
    x = x * y[:, :, None, None]
    return jax.nn.relu(conv(x, params['conv_w'], 'VALID'))


def init_params(key, channels, reduction=16):
    C = channels
    hidden = (2 * C) // reduction
    assert hidden >= 1, "pick channels >= reduction/2"
    ks = jax.random.split(key, 16)
    return {
        'conv1_w':  jax.random.normal(ks[0], (C, 2 * C, 1, 1), jnp.float32) * 0.1,
        'bn1_gamma': jax.random.uniform(ks[1], (C,), jnp.float32, 0.5, 1.5),
        'bn1_beta': jax.random.normal(ks[2], (C,), jnp.float32) * 0.1,
        'bn1_mean': jax.random.normal(ks[3], (C,), jnp.float32) * 0.1,
        'bn1_var':  jax.random.uniform(ks[4], (C,), jnp.float32, 0.5, 1.5),
        'conv2_w':  jax.random.normal(ks[5], (C, C, 3, 3), jnp.float32) * 0.1,
        'bn2_gamma': jax.random.uniform(ks[6], (C,), jnp.float32, 0.5, 1.5),
        'bn2_beta': jax.random.normal(ks[7], (C,), jnp.float32) * 0.1,
        'bn2_mean': jax.random.normal(ks[8], (C,), jnp.float32) * 0.1,
        'bn2_var':  jax.random.uniform(ks[9], (C,), jnp.float32, 0.5, 1.5),
        'se_fc1_w': jax.random.normal(ks[10], (hidden, 2 * C), jnp.float32) * 0.1,
        'se_fc2_w': jax.random.normal(ks[11], (2 * C, hidden), jnp.float32) * 0.1,
        'conv_w':   jax.random.normal(ks[12], (C, 2 * C, 1, 1), jnp.float32) * 0.1,
    }


if __name__ == "__main__":
    key = jax.random.PRNGKey(0)
    kp, ke, kc = jax.random.split(key, 3)
    B, C, H, W = 2, 16, 16, 16            # SE hidden = 32 // 16 = 2
    params = init_params(kp, C)
    equi_feat = jax.random.normal(ke, (B, C, H, W), jnp.float32)
    c2e_feat = jax.random.normal(kc, (B, C, H, W), jnp.float32)

    # row_tile=4 -> grid=(2, 4): exercises the halo / multi-tile path.
    out = cee_layer_pallas(equi_feat, c2e_feat, params, row_tile=4)
    out = jax.block_until_ready(out)

    ref = cee_layer_ref(equi_feat, c2e_feat, params)
    # bf16 MXU operands -> loosen tolerances vs the f32 reference.
    np.testing.assert_allclose(np.asarray(out), np.asarray(ref),
                               atol=5e-2, rtol=5e-2)
    print("KERNEL_OK")
</pallas_src>

<mosaic_0001>
module attributes {stable_mosaic.version = 11 : i64} {
  func.func @_conv_block_kernel(%arg0: i32, %arg1: i32, %arg2: memref<1x1x96x32xbf16, #tpu.memory_space<vmem>>, %arg3: memref<32x16xbf16, #tpu.memory_space<vmem>>, %arg4: memref<1x16xf32, #tpu.memory_space<vmem>>, %arg5: memref<3x3x16x16xbf16, #tpu.memory_space<vmem>>, %arg6: memref<1x16xf32, #tpu.memory_space<vmem>>, %arg7: memref<1x1x64x32xbf16, #tpu.memory_space<vmem>>, %arg8: memref<1x1x1x32xf32, #tpu.memory_space<vmem>>, %arg9: memref<112x16xf32, #tpu.memory_space<vmem>>) attributes {dimension_semantics = [#tpu.dimension_semantics<parallel>, #tpu.dimension_semantics<parallel>], iteration_bounds = array<i64: 2, 4>, scalar_prefetch = 0 : i64, scratch_operands = 1 : i64, tpu.core_type = #tpu.core_type<tc>, window_params = [{transform_indices = @transform_0, window_bounds = array<i64: 1, 1, 96, 32>}, {pipeline_mode = #tpu.pipeline_mode<synchronous>, transform_indices = @transform_1, window_bounds = array<i64: 32, 16>}, {pipeline_mode = #tpu.pipeline_mode<synchronous>, transform_indices = @transform_2, window_bounds = array<i64: 1, 16>}, {pipeline_mode = #tpu.pipeline_mode<synchronous>, transform_indices = @transform_3, window_bounds = array<i64: 3, 3, 16, 16>}, {pipeline_mode = #tpu.pipeline_mode<synchronous>, transform_indices = @transform_4, window_bounds = array<i64: 1, 16>}, {transform_indices = @transform_5, window_bounds = array<i64: 1, 1, 64, 32>}, {transform_indices = @transform_6, window_bounds = array<i64: 1, 1, 1, 32>}]} {
    %c0 = arith.constant 0 : index
    %c0_0 = arith.constant 0 : index
    %c0_1 = arith.constant 0 : index
    %c0_2 = arith.constant 0 : index
    %0 = vector.load %arg2[%c0, %c0_0, %c0_1, %c0_2] : memref<1x1x96x32xbf16, #tpu.memory_space<vmem>>, vector<1x1x96x32xbf16>
    %1 = vector.shape_cast %0 : vector<1x1x96x32xbf16> to vector<96x32xbf16>
    %c0_3 = arith.constant 0 : index
    %c0_4 = arith.constant 0 : index
    %2 = vector.load %arg3[%c0_3, %c0_4] : memref<32x16xbf16, #tpu.memory_space<vmem>>, vector<32x16xbf16>
    %cst = arith.constant dense<0.000000e+00> : vector<96x16xf32>
    %3 = tpu.matmul %1, %2, %cst {dimension_numbers = #tpu.dot_dimension_numbers<[1], [0], [0], [1], [0, 0, 1, 1], [], []>} : vector<96x32xbf16>, vector<32x16xbf16>, vector<96x16xf32> -> vector<96x16xf32>
    %c0_5 = arith.constant 0 : index
    %c0_6 = arith.constant 0 : index
    %4 = vector.load %arg4[%c0_5, %c0_6] : memref<1x16xf32, #tpu.memory_space<vmem>>, vector<1x16xf32>
    %5 = vector.broadcast %4 : vector<1x16xf32> to vector<96x16xf32>
    %6 = arith.addf %3, %5 : vector<96x16xf32>
    %cst_7 = arith.constant 0.000000e+00 : f32
    %7 = vector.broadcast %cst_7 : f32 to vector<96x16xf32>
    %8 = arith.maximumf %6, %7 : vector<96x16xf32>
    %cst_8 = arith.constant 0.000000e+00 : f32
    %9 = vector.broadcast %cst_8 : f32 to vector<8x16xf32>
    %c0_9 = arith.constant 0 : index
    %c0_10 = arith.constant 0 : index
    %10 = vector.load %arg9[%c0_9, %c0_10] : memref<112x16xf32, #tpu.memory_space<vmem>>, vector<8x16xf32>
    tpu.vector_store %arg9[%c0_9, %c0_10], %9 {strides = array<i32>} : memref<112x16xf32, #tpu.memory_space<vmem>>, vector<8x16xf32>,
    %cst_11 = arith.constant 0.000000e+00 : f32
    %11 = vector.broadcast %cst_11 : f32 to vector<8x16xf32>
    %c104 = arith.constant 104 : index
    %c0_12 = arith.constant 0 : index
    %12 = vector.load %arg9[%c104, %c0_12] : memref<112x16xf32, #tpu.memory_space<vmem>>, vector<8x16xf32>
    tpu.vector_store %arg9[%c104, %c0_12], %11 {strides = array<i32>} : memref<112x16xf32, #tpu.memory_space<vmem>>, vector<8x16xf32>,
    %c8 = arith.constant 8 : index
    %c0_13 = arith.constant 0 : index
    %13 = vector.load %arg9[%c8, %c0_13] : memref<112x16xf32, #tpu.memory_space<vmem>>, vector<96x16xf32>
    tpu.vector_store %arg9[%c8, %c0_13], %8 {strides = array<i32>} : memref<112x16xf32, #tpu.memory_space<vmem>>, vector<96x16xf32>,
    %c0_i32 = arith.constant 0 : i32
    %14 = arith.cmpi eq, %arg1, %c0_i32 : i32
    %15 = arith.extui %14 : i1 to i32
    %c0_i32_14 = arith.constant 0 : i32
    %16 = arith.cmpi ne, %15, %c0_i32_14 : i32
    scf.if %16 {
      %cst_98 = arith.constant 0.000000e+00 : f32
      %124 = vector.broadcast %cst_98 : f32 to vector<16x16xf32>
      %c8_99 = arith.constant 8 : index
      %c0_100 = arith.constant 0 : index
      %125 = vector.load %arg9[%c8_99, %c0_100] : memref<112x16xf32, #tpu.memory_space<vmem>>, vector<16x16xf32>
      tpu.vector_store %arg9[%c8_99, %c0_100], %124 {strides = array<i32>} : memref<112x16xf32, #tpu.memory_space<vmem>>, vector<16x16xf32>,
    } else {
    }
    %c3_i32 = arith.constant 3 : i32
    %17 = arith.cmpi eq, %arg1, %c3_i32 : i32
    %18 = arith.extui %17 : i1 to i32
    %c0_i32_15 = arith.constant 0 : i32
    %19 = arith.cmpi ne, %18, %c0_i32_15 : i32
    scf.if %19 {
      %cst_98 = arith.constant 0.000000e+00 : f32
      %124 = vector.broadcast %cst_98 : f32 to vector<16x16xf32>
      %c88 = arith.constant 88 : index
      %c0_99 = arith.constant 0 : index
      %125 = vector.load %arg9[%c88, %c0_99] : memref<112x16xf32, #tpu.memory_space<vmem>>, vector<16x16xf32>
      tpu.vector_store %arg9[%c88, %c0_99], %124 {strides = array<i32>} : memref<112x16xf32, #tpu.memory_space<vmem>>, vector<16x16xf32>,
    } else {
    }
    %20 = tpu.iota {dimensions = array<i32: 0>} : vector<96x16xi32>
    %c16_i32 = arith.constant 16 : i32
    %c0_i32_16 = arith.constant 0 : i32
    %21 = arith.cmpi eq, %c16_i32, %c0_i32_16 : i32
    %c1_i32 = arith.constant 1 : i32
    %22 = arith.select %21, %c1_i32, %c16_i32 : i32
    %23 = vector.broadcast %22 : i32 to vector<96x16xi32>
    %24 = arith.remsi %20, %23 : vector<96x16xi32>
    %c0_i32_17 = arith.constant 0 : i32
    %25 = vector.broadcast %c0_i32_17 : i32 to vector<96x16xi32>
    %26 = arith.cmpi ne, %24, %25 : vector<96x16xi32>
    %c0_i32_18 = arith.constant 0 : i32
    %27 = vector.broadcast %c0_i32_18 : i32 to vector<96x16xi32>
    %28 = arith.cmpi slt, %24, %27 : vector<96x16xi32>
    %c0_i32_19 = arith.constant 0 : i32
    %29 = arith.cmpi slt, %22, %c0_i32_19 : i32
    %30 = vector.broadcast %29 : i1 to vector<96x16xi1>
    %31 = vector.broadcast %30 : vector<96x16xi1> to vector<96x16xi1>
    %32 = arith.xori %28, %31 : vector<96x16xi1>
    %33 = arith.andi %32, %26 : vector<96x16xi1>
    %34 = vector.broadcast %22 : i32 to vector<96x16xi32>
    %35 = arith.addi %24, %34 : vector<96x16xi32>
    %36 = arith.select %33, %35, %24 : vector<96x16xi1>, vector<96x16xi32>
    %c8_20 = arith.constant 8 : index
    %c0_21 = arith.constant 0 : index
    %37 = vector.load %arg9[%c8_20, %c0_21] : memref<112x16xf32, #tpu.memory_space<vmem>>, vector<96x16xf32>
    %38 = arith.truncf %37 : vector<96x16xf32> to vector<96x16xbf16>
    %c0_i32_22 = arith.constant 0 : i32
    %39 = vector.broadcast %c0_i32_22 : i32 to vector<96x16xi32>
    %40 = arith.cmpi ne, %36, %39 : vector<96x16xi32>
    %c7 = arith.constant 7 : index
    %c0_23 = arith.constant 0 : index
    %41 = vector.load %arg9[%c7, %c0_23] : memref<112x16xf32, #tpu.memory_space<vmem>>, vector<96x16xf32>
    %cst_24 = arith.constant 0.000000e+00 : f32
    %42 = vector.broadcast %cst_24 : f32 to vector<96x16xf32>
    %43 = arith.select %40, %41, %42 : vector<96x16xi1>, vector<96x16xf32>
    %44 = arith.truncf %43 : vector<96x16xf32> to vector<96x16xbf16>
    %c15_i32 = arith.constant 15 : i32
    %45 = vector.broadcast %c15_i32 : i32 to vector<96x16xi32>
    %46 = arith.cmpi ne, %36, %45 : vector<96x16xi32>
    %c9 = arith.constant 9 : index
    %c0_25 = arith.constant 0 : index
    %47 = vector.load %arg9[%c9, %c0_25] : memref<112x16xf32, #tpu.memory_space<vmem>>, vector<96x16xf32>
    %cst_26 = arith.constant 0.000000e+00 : f32
    %48 = vector.broadcast %cst_26 : f32 to vector<96x16xf32>
    %49 = arith.select %46, %47, %48 : vector<96x16xi1>, vector<96x16xf32>
    %50 = arith.truncf %49 : vector<96x16xf32> to vector<96x16xbf16>
    %cst_27 = arith.constant 0.000000e+00 : f32
    %51 = vector.broadcast %cst_27 : f32 to vector<64x16xf32>
    %52 = vector.extract_strided_slice %44 {offsets = [0, 0], sizes = [64, 16], strides = [1, 1]} : vector<96x16xbf16> to vector<64x16xbf16>
    %c0_28 = arith.constant 0 : index
    %c0_29 = arith.constant 0 : index
    %c0_30 = arith.constant 0 : index
    %c0_31 = arith.constant 0 : index
    %53 = vector.load %arg5[%c0_28, %c0_29, %c0_30, %c0_31] : memref<3x3x16x16xbf16, #tpu.memory_space<vmem>>, vector<1x1x16x16xbf16>
    %54 = vector.shape_cast %53 : vector<1x1x16x16xbf16> to vector<16x16xbf16>
    %cst_32 = arith.constant dense<0.000000e+00> : vector<64x16xf32>
    %55 = tpu.matmul %52, %54, %cst_32 {dimension_numbers = #tpu.dot_dimension_numbers<[1], [0], [0], [1], [0, 0, 1, 1], [], []>} : vector<64x16xbf16>, vector<16x16xbf16>, vector<64x16xf32> -> vector<64x16xf32>
    %56 = arith.addf %51, %55 : vector<64x16xf32>
    %57 = vector.extract_strided_slice %38 {offsets = [0, 0], sizes = [64, 16], strides = [1, 1]} : vector<96x16xbf16> to vector<64x16xbf16>
    %c0_33 = arith.constant 0 : index
    %c1 = arith.constant 1 : index
    %c0_34 = arith.constant 0 : index
    %c0_35 = arith.constant 0 : index
    %58 = vector.load %arg5[%c0_33, %c1, %c0_34, %c0_35] : memref<3x3x16x16xbf16, #tpu.memory_space<vmem>>, vector<1x1x16x16xbf16>
    %59 = vector.shape_cast %58 : vector<1x1x16x16xbf16> to vector<16x16xbf16>
    %cst_36 = arith.constant dense<0.000000e+00> : vector<64x16xf32>
    %60 = tpu.matmul %57, %59, %cst_36 {dimension_numbers = #tpu.dot_dimension_numbers<[1], [0], [0], [1], [0, 0, 1, 1], [], []>} : vector<64x16xbf16>, vector<16x16xbf16>, vector<64x16xf32> -> vector<64x16xf32>
    %61 = arith.addf %56, %60 : vector<64x16xf32>
    %62 = vector.extract_strided_slice %50 {offsets = [0, 0], sizes = [64, 16], strides = [1, 1]} : vector<96x16xbf16> to vector<64x16xbf16>
    %c0_37 = arith.constant 0 : index
    %c2 = arith.constant 2 : index
    %c0_38 = arith.constant 0 : index
    %c0_39 = arith.constant 0 : index
    %63 = vector.load %arg5[%c0_37, %c2, %c0_38, %c0_39] : memref<3x3x16x16xbf16, #tpu.memory_space<vmem>>, vector<1x1x16x16xbf16>
    %64 = vector.shape_cast %63 : vector<1x1x16x16xbf16> to vector<16x16xbf16>
    %cst_40 = arith.constant dense<0.000000e+00> : vector<64x16xf32>
    %65 = tpu.matmul %62, %64, %cst_40 {dimension_numbers = #tpu.dot_dimension_numbers<[1], [0], [0], [1], [0, 0, 1, 1], [], []>} : vector<64x16xbf16>, vector<16x16xbf16>, vector<64x16xf32> -> vector<64x16xf32>
    %66 = arith.addf %61, %65 : vector<64x16xf32>
    %67 = vector.extract_strided_slice %44 {offsets = [16, 0], sizes = [64, 16], strides = [1, 1]} : vector<96x16xbf16> to vector<64x16xbf16>
    %c1_41 = arith.constant 1 : index
    %c0_42 = arith.constant 0 : index
    %c0_43 = arith.constant 0 : index
    %c0_44 = arith.constant 0 : index
    %68 = vector.load %arg5[%c1_41, %c0_42, %c0_43, %c0_44] : memref<3x3x16x16xbf16, #tpu.memory_space<vmem>>, vector<1x1x16x16xbf16>
    %69 = vector.shape_cast %68 : vector<1x1x16x16xbf16> to vector<16x16xbf16>
    %cst_45 = arith.constant dense<0.000000e+00> : vector<64x16xf32>
    %70 = tpu.matmul %67, %69, %cst_45 {dimension_numbers = #tpu.dot_dimension_numbers<[1], [0], [0], [1], [0, 0, 1, 1], [], []>} : vector<64x16xbf16>, vector<16x16xbf16>, vector<64x16xf32> -> vector<64x16xf32>
    %71 = arith.addf %66, %70 : vector<64x16xf32>
    %72 = vector.extract_strided_slice %38 {offsets = [16, 0], sizes = [64, 16], strides = [1, 1]} : vector<96x16xbf16> to vector<64x16xbf16>
    %c1_46 = arith.constant 1 : index
    %c1_47 = arith.constant 1 : index
    %c0_48 = arith.constant 0 : index
    %c0_49 = arith.constant 0 : index
    %73 = vector.load %arg5[%c1_46, %c1_47, %c0_48, %c0_49] : memref<3x3x16x16xbf16, #tpu.memory_space<vmem>>, vector<1x1x16x16xbf16>
    %74 = vector.shape_cast %73 : vector<1x1x16x16xbf16> to vector<16x16xbf16>
    %cst_50 = arith.constant dense<0.000000e+00> : vector<64x16xf32>
    %75 = tpu.matmul %72, %74, %cst_50 {dimension_numbers = #tpu.dot_dimension_numbers<[1], [0], [0], [1], [0, 0, 1, 1], [], []>} : vector<64x16xbf16>, vector<16x16xbf16>, vector<64x16xf32> -> vector<64x16xf32>
    %76 = arith.addf %71, %75 : vector<64x16xf32>
    %77 = vector.extract_strided_slice %50 {offsets = [16, 0], sizes = [64, 16], strides = [1, 1]} : vector<96x16xbf16> to vector<64x16xbf16>
    %c1_51 = arith.constant 1 : index
    %c2_52 = arith.constant 2 : index
    %c0_53 = arith.constant 0 : index
    %c0_54 = arith.constant 0 : index
    %78 = vector.load %arg5[%c1_51, %c2_52, %c0_53, %c0_54] : memref<3x3x16x16xbf16, #tpu.memory_space<vmem>>, vector<1x1x16x16xbf16>
    %79 = vector.shape_cast %78 : vector<1x1x16x16xbf16> to vector<16x16xbf16>
    %cst_55 = arith.constant dense<0.000000e+00> : vector<64x16xf32>
    %80 = tpu.matmul %77, %79, %cst_55 {dimension_numbers = #tpu.dot_dimension_numbers<[1], [0], [0], [1], [0, 0, 1, 1], [], []>} : vector<64x16xbf16>, vector<16x16xbf16>, vector<64x16xf32> -> vector<64x16xf32>
    %81 = arith.addf %76, %80 : vector<64x16xf32>
    %82 = vector.extract_strided_slice %44 {offsets = [32, 0], sizes = [64, 16], strides = [1, 1]} : vector<96x16xbf16> to vector<64x16xbf16>
    %c2_56 = arith.constant 2 : index
    %c0_57 = arith.constant 0 : index
    %c0_58 = arith.constant 0 : index
    %c0_59 = arith.constant 0 : index
    %83 = vector.load %arg5[%c2_56, %c0_57, %c0_58, %c0_59] : memref<3x3x16x16xbf16, #tpu.memory_space<vmem>>, vector<1x1x16x16xbf16>
    %84 = vector.shape_cast %83 : vector<1x1x16x16xbf16> to vector<16x16xbf16>
    %cst_60 = arith.constant dense<0.000000e+00> : vector<64x16xf32>
    %85 = tpu.matmul %82, %84, %cst_60 {dimension_numbers = #tpu.dot_dimension_numbers<[1], [0], [0], [1], [0, 0, 1, 1], [], []>} : vector<64x16xbf16>, vector<16x16xbf16>, vector<64x16xf32> -> vector<64x16xf32>
    %86 = arith.addf %81, %85 : vector<64x16xf32>
    %87 = vector.extract_strided_slice %38 {offsets = [32, 0], sizes = [64, 16], strides = [1, 1]} : vector<96x16xbf16> to vector<64x16xbf16>
    %c2_61 = arith.constant 2 : index
    %c1_62 = arith.constant 1 : index
    %c0_63 = arith.constant 0 : index
    %c0_64 = arith.constant 0 : index
    %88 = vector.load %arg5[%c2_61, %c1_62, %c0_63, %c0_64] : memref<3x3x16x16xbf16, #tpu.memory_space<vmem>>, vector<1x1x16x16xbf16>
    %89 = vector.shape_cast %88 : vector<1x1x16x16xbf16> to vector<16x16xbf16>
    %cst_65 = arith.constant dense<0.000000e+00> : vector<64x16xf32>
    %90 = tpu.matmul %87, %89, %cst_65 {dimension_numbers = #tpu.dot_dimension_numbers<[1], [0], [0], [1], [0, 0, 1, 1], [], []>} : vector<64x16xbf16>, vector<16x16xbf16>, vector<64x16xf32> -> vector<64x16xf32>
    %91 = arith.addf %86, %90 : vector<64x16xf32>
    %92 = vector.extract_strided_slice %50 {offsets = [32, 0], sizes = [64, 16], strides = [1, 1]} : vector<96x16xbf16> to vector<64x16xbf16>
    %c2_66 = arith.constant 2 : index
    %c2_67 = arith.constant 2 : index
    %c0_68 = arith.constant 0 : index
    %c0_69 = arith.constant 0 : index
    %93 = vector.load %arg5[%c2_66, %c2_67, %c0_68, %c0_69] : memref<3x3x16x16xbf16, #tpu.memory_space<vmem>>, vector<1x1x16x16xbf16>
    %94 = vector.shape_cast %93 : vector<1x1x16x16xbf16> to vector<16x16xbf16>
    %cst_70 = arith.constant dense<0.000000e+00> : vector<64x16xf32>
    %95 = tpu.matmul %92, %94, %cst_70 {dimension_numbers = #tpu.dot_dimension_numbers<[1], [0], [0], [1], [0, 0, 1, 1], [], []>} : vector<64x16xbf16>, vector<16x16xbf16>, vector<64x16xf32> -> vector<64x16xf32>
    %96 = arith.addf %91, %95 : vector<64x16xf32>
    %c0_71 = arith.constant 0 : index
    %c0_72 = arith.constant 0 : index
    %97 = vector.load %arg6[%c0_71, %c0_72] : memref<1x16xf32, #tpu.memory_space<vmem>>, vector<1x16xf32>
    %98 = vector.broadcast %97 : vector<1x16xf32> to vector<64x16xf32>
    %99 = arith.addf %96, %98 : vector<64x16xf32>
    %c0_73 = arith.constant 0 : index
    %c0_74 = arith.constant 0 : index
    %c16 = arith.constant 16 : index
    %c0_75 = arith.constant 0 : index
    %100 = vector.load %arg2[%c0_73, %c0_74, %c16, %c0_75] : memref<1x1x96x32xbf16, #tpu.memory_space<vmem>>, vector<1x1x64x16xbf16>
    %101 = vector.shape_cast %100 : vector<1x1x64x16xbf16> to vector<64x16xbf16>
    %c0_76 = arith.constant 0 : index
    %c0_77 = arith.constant 0 : index
    %c16_78 = arith.constant 16 : index
    %c16_79 = arith.constant 16 : index
    %102 = vector.load %arg2[%c0_76, %c0_77, %c16_78, %c16_79] : memref<1x1x96x32xbf16, #tpu.memory_space<vmem>>, vector<1x1x64x16xbf16>
    %103 = vector.shape_cast %102 : vector<1x1x64x16xbf16> to vector<64x16xbf16>
    %104 = arith.extf %103 : vector<64x16xbf16> to vector<64x16xf32>
    %105 = arith.addf %104, %99 : vector<64x16xf32>
    %c0_80 = arith.constant 0 : index
    %c0_81 = arith.constant 0 : index
    %c0_82 = arith.constant 0 : index
    %c0_83 = arith.constant 0 : index
    %106 = vector.load %arg7[%c0_80, %c0_81, %c0_82, %c0_83] : memref<1x1x64x32xbf16, #tpu.memory_space<vmem>>, vector<1x1x64x16xbf16>
    %107 = vector.shape_cast %106 : vector<1x1x64x16xbf16> to vector<64x16xbf16>
    %108 = vector.shape_cast %101 : vector<64x16xbf16> to vector<1x1x64x16xbf16>
    tpu.vector_store %arg7[%c0_80, %c0_81, %c0_82, %c0_83], %108 {strides = array<i32>} : memref<1x1x64x32xbf16, #tpu.memory_space<vmem>>, vector<1x1x64x16xbf16>,
    %109 = arith.truncf %105 : vector<64x16xf32> to vector<64x16xbf16>
    %c0_84 = arith.constant 0 : index
    %c0_85 = arith.constant 0 : index
    %c0_86 = arith.constant 0 : index
    %c16_87 = arith.constant 16 : index
    %110 = vector.load %arg7[%c0_84, %c0_85, %c0_86, %c16_87] : memref<1x1x64x32xbf16, #tpu.memory_space<vmem>>, vector<1x1x64x16xbf16>
    %111 = vector.shape_cast %110 : vector<1x1x64x16xbf16> to vector<64x16xbf16>
    %112 = vector.shape_cast %109 : vector<64x16xbf16> to vector<1x1x64x16xbf16>
    tpu.vector_store %arg7[%c0_84, %c0_85, %c0_86, %c16_87], %112 {strides = array<i32>} : memref<1x1x64x32xbf16, #tpu.memory_space<vmem>>, vector<1x1x64x16xbf16>,
    %113 = arith.extf %101 : vector<64x16xbf16> to vector<64x16xf32>
    %cst_88 = arith.constant dense<0.000000e+00> : vector<16xf32>
    %114 = vector.multi_reduction <add>, %113, %cst_88 [0] : vector<64x16xf32> to vector<16xf32>
    %115 = vector.shape_cast %114 : vector<16xf32> to vector<1x16xf32>
    %c0_89 = arith.constant 0 : index
    %c0_90 = arith.constant 0 : index
    %c0_91 = arith.constant 0 : index
    %c0_92 = arith.constant 0 : index
    %116 = vector.load %arg8[%c0_89, %c0_90, %c0_91, %c0_92] : memref<1x1x1x32xf32, #tpu.memory_space<vmem>>, vector<1x1x1x16xf32>
    %117 = vector.shape_cast %116 : vector<1x1x1x16xf32> to vector<1x16xf32>
    %118 = vector.shape_cast %115 : vector<1x16xf32> to vector<1x1x1x16xf32>
    tpu.vector_store %arg8[%c0_89, %c0_90, %c0_91, %c0_92], %118 {strides = array<i32>} : memref<1x1x1x32xf32, #tpu.memory_space<vmem>>, vector<1x1x1x16xf32>,
    %cst_93 = arith.constant dense<0.000000e+00> : vector<16xf32>
    %119 = vector.multi_reduction <add>, %105, %cst_93 [0] : vector<64x16xf32> to vector<16xf32>
    %120 = vector.shape_cast %119 : vector<16xf32> to vector<1x16xf32>
    %c0_94 = arith.constant 0 : index
    %c0_95 = arith.constant 0 : index
    %c0_96 = arith.constant 0 : index
    %c16_97 = arith.constant 16 : index
    %121 = vector.load %arg8[%c0_94, %c0_95, %c0_96, %c16_97] : memref<1x1x1x32xf32, #tpu.memory_space<vmem>>, vector<1x1x1x16xf32>
    %122 = vector.shape_cast %121 : vector<1x1x1x16xf32> to vector<1x16xf32>
    %123 = vector.shape_cast %120 : vector<1x16xf32> to vector<1x1x1x16xf32>
    tpu.vector_store %arg8[%c0_94, %c0_95, %c0_96, %c16_97], %123 {strides = array<i32>} : memref<1x1x1x32xf32, #tpu.memory_space<vmem>>, vector<1x1x1x16xf32>,
    return
  }
  func.func @transform_0(%arg0: i32, %arg1: i32) -> (i32, i32, i32, i32) {
    %c0_i32 = arith.constant 0 : i32
    %c0_i32_0 = arith.constant 0 : i32
    %c0_i32_1 = arith.constant 0 : i32
    return %arg0, %arg1, %c0_i32, %c0_i32_0 : i32, i32, i32, i32
  }
  func.func @transform_1(%arg0: i32, %arg1: i32) -> (i32, i32) {
    %c0_i32 = arith.constant 0 : i32
    %c0_i32_0 = arith.constant 0 : i32
    %c0_i32_1 = arith.constant 0 : i32
    return %c0_i32, %c0_i32_0 : i32, i32
  }
  func.func @transform_2(%arg0: i32, %arg1: i32) -> (i32, i32) {
    %c0_i32 = arith.constant 0 : i32
    %c0_i32_0 = arith.constant 0 : i32
    %c0_i32_1 = arith.constant 0 : i32
    return %c0_i32, %c0_i32_0 : i32, i32
  }
  func.func @transform_3(%arg0: i32, %arg1: i32) -> (i32, i32, i32, i32) {
    %c0_i32 = arith.constant 0 : i32
    %c0_i32_0 = arith.constant 0 : i32
    %c0_i32_1 = arith.constant 0 : i32
    %c0_i32_2 = arith.constant 0 : i32
    %c0_i32_3 = arith.constant 0 : i32
    return %c0_i32, %c0_i32_0, %c0_i32_1, %c0_i32_2 : i32, i32, i32, i32
  }
  func.func @transform_4(%arg0: i32, %arg1: i32) -> (i32, i32) {
    %c0_i32 = arith.constant 0 : i32
    %c0_i32_0 = arith.constant 0 : i32
    %c0_i32_1 = arith.constant 0 : i32
    return %c0_i32, %c0_i32_0 : i32, i32
  }
  func.func @transform_5(%arg0: i32, %arg1: i32) -> (i32, i32, i32, i32) {
    %c0_i32 = arith.constant 0 : i32
    %c0_i32_0 = arith.constant 0 : i32
    %c0_i32_1 = arith.constant 0 : i32
    return %arg0, %arg1, %c0_i32, %c0_i32_0 : i32, i32, i32, i32
  }
  func.func @transform_6(%arg0: i32, %arg1: i32) -> (i32, i32, i32, i32) {
    %c0_i32 = arith.constant 0 : i32
    %c0_i32_0 = arith.constant 0 : i32
    %c0_i32_1 = arith.constant 0 : i32
    return %arg0, %arg1, %c0_i32, %c0_i32_0 : i32, i32, i32, i32
  }
}

</mosaic_0001>

<bundles_post_ra>
// kernel: tpu_custom_call.1
= control target key start
LH: loop header
LB: loop body
LE: loop exit
PB: predicated region body
PF: predicated region fallthrough
CT: control target
= control target key end

     0   :  { %s2871_s0 = inlined_call_operand.vmem [shape: bf16[2,4,96,32], index: 0, kind: input, shape index: {}]   ;;  %s2872_s1 = inlined_call_operand.vmem [shape: bf16[32,16], index: 1, kind: input, shape index: {}]   ;;  %s2873_s2 = inlined_call_operand.vmem [shape: f32[1,16], index: 2, kind: input, shape index: {}]   ;;  %s2874_s3 = inlined_call_operand.vmem [shape: bf16[3,3,16,16], index: 3, kind: input, shape index: {}]   ;;  %s2875_s4 = inlined_call_operand.vmem [shape: f32[1,16], index: 4, kind: input, shape index: {}]   ;;  %s2876_s5 = inlined_call_operand.vmem [shape: bf16[2,4,64,32], index: 5, kind: output, shape index: {0}]   ;;  %s2877_s6 = inlined_call_operand.hbm [shape: f32[2,4,1,32], index: 6, kind: output, shape index: {1}]  }
   0x1   :  { %2882 = sst [smem:[#allocation10_spill]] %s2872_s1 }
   0x2   :  { %12 = vsyncpa [#allocation4], 0 }
   0x3   :  { %14 = vsyncpa [#allocation4 + $0x1], 0  ;;  %s2415_s21 = smov 0   ;;  %s2417_s22 = smov 0  }
   0x4   :  { %s2419_s23 = smov 0   ;;  %s2421_s24 = smov 0  }
   0x5   :  { %s2423_s25 = smov 0   ;;  %s2425_s26 = smov 0  }
   0x6   :  { %s2427_s27 = smov 0   ;;  %s2429_s28 = smov 0  }
   0x7 LB: > { %2883 = sst [smem:[#allocation6_spill]] %s2365_s26  ;;  %s1852_s29 = sadd.s32 4294967295, %s2373_s28   ;;  %s2373_s28 = sphi %s2429_s28, %s20_s28   ;;  %s2369_s27 = sphi %s2427_s27, %s2903_s27   ;;  %s2365_s26 = sphi %s2425_s26, %s2902_s26   ;;  %s2361_s25 = sphi %s2423_s25, %s2901_s25   ;;  %s2357_s24 = sphi %s2421_s24, %s2900_s24   ;;  %s2353_s23 = sphi %s2419_s23, %s2906_s23   ;;  %s2349_s22 = sphi %s2417_s22, %s2905_s22   ;;  %s2345_s21 = sphi %s2415_s21, %s2904_s21  }
   0x8   : > { %2884 = sst [smem:[#allocation7_spill]] %s2369_s27  ;;  %s1853_s30 = sadd.s32 4294967294, %s2373_s28  }
   0x9   : > { %s29_s7 = sadd.s32 1, %s2365_s26  ;;  %s32_s8 = sadd.s32 1, %s2369_s27 }
   0xa   : > { %p30_p0 = scmp.ge.s32.totalorder %s29_s7, 4  ;;  %p191_p1 = scmp.ne.s32.totalorder %s2353_s23, %s2349_s22 }
   0xb   : > { %p192_p2 = scmp.eq.s32.totalorder %s1852_s29, 7  ;;  %p197_p5 = scmp.ne.s32.totalorder %s2349_s22, %s2345_s21 }
   0xc   : > { %s2908_s7 = smov (%p30_p0, %s29_s7), 0  ;;  %s2910_s8 = smov (!%p30_p0, %s32_s8), %s2369_s27 }
   0xd   : > { %2885 = sst [smem:[#allocation8_spill]] %s2908_s7  ;;  %s177_s9 = ssub.s32 %s2365_s26, %s2908_s7 }
   0xe   : > { %p2466_p3 = por %p192_p2, %p191_p1  ;;  %p34_p4 = scmp.ge.s32.totalorder %s2910_s8, 2 }
   0xf   : > { %p198_p6 = scmp.eq.s32.totalorder %s1853_s30, 7  ;;  %p1856_p7 = scmp.ge.s32.totalorder %s2373_s28, 1 }
  0x10   : > { %s2912_s8 = smov (%p34_p4, %s2910_s8), 0  ;;  %p240_p9 = scmp.lt.s32.totalorder %s2373_s28, 9 }
  0x11   : > { %2887 = sst [smem:[#allocation9_spill]] %s2912_s8  ;;  %p2475_p8 = por %p198_p6, %p197_p5 }
  0x12   : > { %s176_s12 = ssub.s32 %s2369_s27, %s2912_s8  ;;  %s181_s13 = sadd.s32 1, %s2353_s23 }
  0x13   : > { %s178_s14 = sor.u32 %s177_s9, %s176_s12  ;;  %p241_p10 = pnand %p1856_p7, %p240_p9 }
  0x14   : > { %p179_p11 = scmp.eq.s32.totalorder %s178_s14, 0  ;;  %s2889_s1 = sld [smem:[#allocation10_spill]] (!%p241_p10)  ;;  %vm366_vm0 = vcmask (!%p241_p10), 261120   ;;  %vm478_vm1 = vcmask (!%p241_p10), 130048   ;;  %v2375_v8 = vmov (!%p241_p10), 0.0  }
  0x15   : > { %244 = sbr.rel (%p241_p10) target bundleno = 747 (0x2eb), region = 40  ;;  %p282_p12 = scmp.lt.s32.totalorder (!%p241_p10), %s2361_s25, 1  ;;  %479 = vst.msk [vmem:[#allocation2] sm:$0xff] (!%p241_p10), %vm478_vm1, %v2375_v8  ;;  %480 = vst.msk [vmem:[#allocation2 + $0x68] sm:$0xff] (!%p241_p10), %vm478_vm1, %v2375_v8  ;;  %v1861_v9 = vld [vmem:[%s2873_s2] ss:$0 sm:$0xff] (!%p241_p10) }
  0x16   : > { %s2484_s15 = scalar_select %p179_p11, %s2353_s23, %s181_s13  }
  0x17   : > { %p284_p13 = scmp.lt.s32.totalorder (!%p241_p10), %s2357_s24, 3  ;;  %s2890_s7 = sand.u32 (!%p241_p10), 1, %s2349_s22  }
  0x18   : > { %p1876_p0 = scmp.ne.s32.totalorder (!%p241_p10), %s2357_s24, 0 }
  0x1a   : > { %v2262_v0 = vld [vmem:[%s2889_s1] sm:$0xff] (!%p241_p10)   ;;  %v2263_v1 = vld [vmem:[%s2889_s1 + $0x8] sm:$0xff] (!%p241_p10)  }
  0x1b   : > { %2013 = vmatprep.subr.bf16.mxu0 (!%p241_p10), %v2262_v0 }
  0x1c   : > { %2014 = vmatpush3.bf16.msra.mxu0 %v2262_v0  ;;  %s283_s29 = scalar_select %p282_p12, %s2361_s25, 1 }
  0x1d   : > { %2015 = vmatprep.subr.bf16.mxu0 %v2263_v1  ;;  %s285_s30 = scalar_select %p284_p13, %s2357_s24, 3 }
  0x1e   : > { %s2186_s9 = smul.u32 48, %s283_s29  ;;  %s1859_s12 = sshll.u32 %s283_s29, 5  ;;  %v2376_v46 = vmov (!%p1876_p0), 0.0  }
  0x1f   : > { %s2185_s13 = smul.u32 12, %s285_s30  ;;  %s1858_s14 = sshll.u32 %s285_s30, 3 }
  0x20   : > { %2016 = vmatpush3.bf16.msra.mxu0 %v2263_v1  ;;  %s297_s16 = sadd.s32 %s1859_s12, %s1858_s14 }
  0x21   : > { %s288_s8 = sadd.s32 %s2186_s9, %s2185_s13  ;;  %s1860_s17 = sshll.u32 %s297_s16, 2 }
  0x22   : > { %s1857_s18 = sshll.u32 %s288_s8, 2  ;;  %s2500_s19 = scalar_lea.vmem %s2876_s5, %s1860_s17 }
  0x23   : > { %s2505_s26 = scalar_lea.vmem %s2871_s0, %s1857_s18  ;;  %s2532_s8 = scalar_lea.vmem [#allocation3], %s2890_s7 }
  0x24   : > { %v2264_v2 = vld [vmem:[%s2505_s26] sm:$0xff]   ;;  %v2265_v3 = vld [vmem:[%s2505_s26 + $0x8] sm:$0xff]   ;;  %v2266_v4 = vld [vmem:[%s2505_s26 + $0x10] sm:$0xff]  }
  0x25   : > { %2017 = vmatprep.mubr.msk.bf16.mxu0 %vm366_vm0, %v2264_v2  ;;  %v2267_v5 = vld [vmem:[%s2505_s26 + $0x18] sm:$0xff]   ;;  %v2268_v6 = vld [vmem:[%s2505_s26 + $0x20] sm:$0xff]   ;;  %v2269_v7 = vld [vmem:[%s2505_s26 + $0x28] sm:$0xff]  }
  0x26   : > { %2018 = vmatmul.mubr.msk.bf16.vlgmr.msra.gmra.mrb[0].mxu0 %vm366_vm0, %v2265_v3 }
  0x27   : > { %2021 = vmatprep.mubr.msk.bf16.mxu0 %vm366_vm0, %v2266_v4 }
  0x2e   : > { %2022 = vmatmul.mubr.msk.bf16.gmra.mrb[4].mxu0 %vm366_vm0, %v2267_v5 }
  0x2f   : > { %2025 = vmatprep.mubr.msk.bf16.mxu0 %vm366_vm0, %v2268_v6 }
  0x36   : > { %2026 = vmatmul.mubr.msk.bf16.gmra.mrb[8].mxu0 %vm366_vm0, %v2269_v7 }
  0xf9   : > { %v2019_v10 = vpop.f32.mrb[0].mxu0 }
  0xfa   : > { %v428_v11 = vadd.f32 %v2019_v10, %v1861_v9  ;;  %v419_v12 = vpop.f32.mrb[1].mxu0 }
  0xfb   : > { %v420_v13 = vadd.f32 %v1861_v9, %v419_v12  ;;  %v2020_v14 = vpop.f32.mrb[2].mxu0 }
  0xfc   : > { %v468_v15 = vmax.f32 %v428_v11, 0.0  ;;  %v431_v16 = vadd.f32 %v2020_v14, %v1861_v9  ;;  %v422_v17 = vpop.f32.mrb[3].mxu0 }
  0xfd   : > { %v466_v18 = vmax.f32 %v420_v13, 0.0  ;;  %v423_v19 = vadd.f32 %v1861_v9, %v422_v17 }
  0xfe   : > { %483 = vst.msk [vmem:[#allocation2 + $0x18] sm:$0xff] %vm478_vm1, %v468_v15  ;;  %v469_v20 = vmax.f32 %v431_v16, 0.0 }
  0xff   : > { %481 = vst.msk [vmem:[#allocation2 + $0x8] sm:$0xff] %vm478_vm1, %v466_v18  ;;  %v467_v21 = vmax.f32 %v423_v19, 0.0 }
 0x100   : > { %484 = vst.msk [vmem:[#allocation2 + $0x20] sm:$0xff] %vm478_vm1, %v469_v20  ;;  %497 = vst.msk [vmem:[#allocation2 + $0x8] sm:$0xff] (!%p1876_p0), %vm478_vm1, %v2376_v46 }
 0x101   : > { %482 = vst.msk [vmem:[#allocation2 + $0x10] sm:$0xff] %vm478_vm1, %v467_v21  ;;  %v2023_v22 = vpop.f32.mrb[4].mxu0 }
 0x102   : > { %v444_v23 = vadd.f32 %v2023_v22, %v1861_v9  ;;  %v435_v24 = vpop.f32.mrb[5].mxu0  ;;  %498 = vst.msk [vmem:[#allocation2 + $0x10] sm:$0xff] (!%p1876_p0), %vm478_vm1, %v2376_v46 }
 0x103   : > { %v436_v25 = vadd.f32 %v1861_v9, %v435_v24  ;;  %v2024_v26 = vpop.f32.mrb[6].mxu0 }
 0x104   : > { %v472_v27 = vmax.f32 %v444_v23, 0.0  ;;  %v447_v28 = vadd.f32 %v2024_v26, %v1861_v9  ;;  %v438_v29 = vpop.f32.mrb[7].mxu0 }
 0x105   : > { %v470_v30 = vmax.f32 %v436_v25, 0.0  ;;  %v439_v31 = vadd.f32 %v1861_v9, %v438_v29 }
 0x106   : > { %487 = vst.msk [vmem:[#allocation2 + $0x38] sm:$0xff] %vm478_vm1, %v472_v27  ;;  %v473_v32 = vmax.f32 %v447_v28, 0.0 }
 0x107   : > { %485 = vst.msk [vmem:[#allocation2 + $0x28] sm:$0xff] %vm478_vm1, %v470_v30  ;;  %v471_v33 = vmax.f32 %v439_v31, 0.0 }
 0x108   : > { %488 = vst.msk [vmem:[#allocation2 + $0x40] sm:$0xff] %vm478_vm1, %v473_v32 }
 0x109   : > { %486 = vst.msk [vmem:[#allocation2 + $0x30] sm:$0xff] %vm478_vm1, %v471_v33  ;;  %v2027_v34 = vpop.f32.mrb[8].mxu0 }
 0x10a   : > { %v460_v35 = vadd.f32 %v2027_v34, %v1861_v9  ;;  %v451_v36 = vpop.f32.mrb[9].mxu0 }
 0x10b   : > { %v452_v37 = vadd.f32 %v1861_v9, %v451_v36  ;;  %v2028_v38 = vpop.f32.mrb[10].mxu0  ;;  %496 = sbr.rel (%p1876_p0) target bundleno = 274 (0x112), region = 44 }
 0x10c   : > { %v476_v39 = vmax.f32 %v460_v35, 0.0  ;;  %v463_v40 = vadd.f32 %v2028_v38, %v1861_v9  ;;  %v454_v41 = vpop.f32.mrb[11].mxu0 }
 0x10d   : > { %v474_v42 = vmax.f32 %v452_v37, 0.0  ;;  %v455_v43 = vadd.f32 %v1861_v9, %v454_v41 }
 0x10e   : > { %491 = vst.msk [vmem:[#allocation2 + $0x58] sm:$0xff] %vm478_vm1, %v476_v39  ;;  %v477_v44 = vmax.f32 %v463_v40, 0.0 }
 0x10f   : > { %489 = vst.msk [vmem:[#allocation2 + $0x48] sm:$0xff] %vm478_vm1, %v474_v42  ;;  %v475_v45 = vmax.f32 %v455_v43, 0.0 }
 0x110   : > { %492 = vst.msk [vmem:[#allocation2 + $0x60] sm:$0xff] %vm478_vm1, %v477_v44 }
 0x111   : > { %490 = vst.msk [vmem:[#allocation2 + $0x50] sm:$0xff] %vm478_vm1, %v475_v45 }
 0x112 PF: > { %p1877_p1 = scmp.ne.s32.totalorder %s2357_s24, 3 }
 0x113   : > { %v2377_v47 = vmov (!%p1877_p1), 0.0  }
 0x114   : > { %502 = sbr.rel (%p1877_p1) target bundleno = 283 (0x11b), region = 48  ;;  %503 = vst.msk [vmem:[#allocation2 + $0x58] sm:$0xff] (!%p1877_p1), %vm478_vm1, %v2377_v47  ;;  %504 = vst.msk [vmem:[#allocation2 + $0x60] sm:$0xff] (!%p1877_p1), %vm478_vm1, %v2377_v47 }
 0x11b PF: > { %v2270_v48 = vld [vmem:[%s2874_s3 + $0x8] sm:$0xff]   ;;  %v505_v49 = vlaneseq  ;;  %v663_v51 = vld [vmem:[#allocation2 + $0x10] sm:$0xff]  ;;  %v664_v52 = vld [vmem:[#allocation2 + $0x18] sm:$0xff]  ;;  %vm1610_vm14 = vcmask 125952   ;;  %s2378_s17 = smov 16   ;;  %vm1681_vm15 = vcmask 122880  }
 0x11c   : > { %v662_v50 = vld [vmem:[#allocation2 + $0x8] sm:$0xff]  ;;  %2029 = vmatprep.subr.bf16.mxu0 %v2270_v48  ;;  %v665_v54 = vld [vmem:[#allocation2 + $0x20] sm:$0xff]  ;;  %v2548_v57 = vld [vmem:[%s2874_s3 + $0x18] sm:$0xff]   ;;  %vm1651_vm0 = vcmask 257152   ;;  %s1734_s1 = sshll.u32 %s2532_s8, 4  ;;  %s2379_s29 = smov [#allocation3]   ;;  %s2817_s1 = int_to_ptr.vmem [resolvable:$true] %s1734_s1 }
 0x11d   : > { %v674_v53 = vpack.c.bf16 %v663_v51, %v662_v50  ;;  %v2543_v55 = vshrl.u32 %v505_v49, 7  ;;  %2030 = vmatpush3.bf16.msra.mxu0 %v2270_v48  ;;  %v675_v56 = vpack.c.bf16 %v665_v54, %v664_v52  ;;  %v698_v59 = vld [vmem:[#allocation2 + $0x37] sm:$0xff]  ;;  %v2272_v60 = vld [vmem:[%s2874_s3 + $0x20] sm:$0xff]   ;;  %2119 = vmatprep.subr.bf16.mxu1 %v2548_v57  ;;  %v666_v0 = vld [vmem:[#allocation2 + $0x28] sm:$0xff]  ;;  %s2283_s30 = sshll.u32 %s2379_s29, 4  ;;  %s2284_s30 = int_to_ptr.vmem [resolvable:$false] %s2283_s30 }
 0x11e   : > { %v699_v61 = vld [vmem:[#allocation2 + $0x3f] sm:$0xff]  ;;  %v700_v63 = vld [vmem:[#allocation2 + $0x47] sm:$0xff]  ;;  %2120 = vmatpush3.bf16.msra.mxu1 %v2548_v57  ;;  %v667_v4 = vld [vmem:[#allocation2 + $0x30] sm:$0xff]  ;;  %s2285_s9 = scalar_lea.vmem %s2284_s30, 32  ;;  %p2286_p6 = scmp.lt.s32.totalorder %s2817_s1, %s2284_s30 }
 0x11f   : > { %2031 = vmatprep.mubr.msk.bf16.mxu0 %vm478_vm1, %v674_v53  ;;  %v512_v58 = vadd.s32 48, %v2543_v55  ;;  %v514_v62 = vadd.s32 64, %v2543_v55  ;;  %v522_v1 = vand.u32 15, %v2543_v55  ;;  %v508_v2 = vadd.s32 16, %v2543_v55  ;;  %v668_v5 = vld [vmem:[#allocation2 + $0x38] sm:$0xff]  ;;  %v669_v6 = vld [vmem:[#allocation2 + $0x40] sm:$0xff]  ;;  %2069 = vmatprep.subr.bf16.mxu1 %v2272_v60 }
 0x120   : > { %2032 = vmatmul.mubr.msk.bf16.vlgmr.msra.gmra.mrb[12].mxu0 %vm478_vm1, %v675_v56  ;;  %v510_v7 = vadd.s32 32, %v2543_v55  ;;  %v2562_v9 = vpack.c.bf16 %v667_v4, %v666_v0  ;;  %v2273_v10 = vld [vmem:[%s2874_s3] sm:$0xff]   ;;  %v701_v11 = vld [vmem:[#allocation2 + $0x4f] sm:$0xff]  ;;  %v2567_v12 = vpack.c.bf16 %v669_v6, %v668_v5  ;;  %v509_v23 = vadd.s32 24, %v2543_v55  ;;  %v694_v26 = vld [vmem:[#allocation2 + $0x17] sm:$0xff] }
 0x121   : > { %v564_v3 = vand.u32 15, %v512_v58  ;;  %v578_v8 = vand.u32 15, %v514_v62  ;;  %2039 = vmatprep.subr.bf16.mxu0 %v2273_v10  ;;  %vm680_vm4 = vcmp.ne.s32.totalorder %v522_v1, 0  ;;  %v692_v14 = vld [vmem:[#allocation2 + $0x7] sm:$0xff]  ;;  %v693_v15 = vld [vmem:[#allocation2 + $0xf] sm:$0xff]  ;;  %v536_v16 = vand.u32 15, %v508_v2 }
 0x122   : > { %2035 = vmatprep.mubr.msk.bf16.mxu0 %vm478_vm1, %v2562_v9  ;;  %2040 = vmatpush3.bf16.msra.mxu0 %v2273_v10  ;;  %v704_v19 = vsel %vm680_vm4, %v692_v14, 0.0  ;;  %v550_v20 = vand.u32 15, %v510_v7  ;;  %v2274_v22 = vld [vmem:[%s2874_s3 + $0x28] sm:$0xff]   ;;  %v2275_v29 = vld [vmem:[%s2874_s3 + $0x10] sm:$0xff]   ;;  %v695_v30 = vld [vmem:[#allocation2 + $0x1f] sm:$0xff]  ;;  %v507_v32 = vadd.s32 8, %v2543_v55 }
 0x123   : > { %vm686_vm2 = vcmp.ne.s32.totalorder %v564_v3, 0  ;;  %vm688_vm3 = vcmp.ne.s32.totalorder %v578_v8, 0  ;;  %v716_v24 = vpack.c.bf16 %v693_v15, %v704_v19  ;;  %vm2581_vm5 = vcmp.ne.s32.totalorder %v536_v16, 0  ;;  %v696_v28 = vld [vmem:[#allocation2 + $0x27] sm:$0xff]  ;;  %v697_v33 = vld [vmem:[#allocation2 + $0x2f] sm:$0xff]  ;;  %2049 = vmatprep.subr.bf16.mxu0 %v2275_v29  ;;  %v736_v48 = vld [vmem:[#allocation2 + $0x19] sm:$0xff] }
 0x124   : > { %v710_v13 = vsel %vm686_vm2, %v698_v59, 0.0  ;;  %v712_v18 = vsel %vm688_vm3, %v700_v63, 0.0  ;;  %vm2587_vm6 = vcmp.ne.s32.totalorder %v550_v20, 0  ;;  %v706_v31 = vsel %vm2581_vm5, %v694_v26, 0.0  ;;  %v737_v41 = vld [vmem:[#allocation2 + $0x21] sm:$0xff]  ;;  %v2276_v42 = vld [vmem:[%s2874_s3 + $0x30] sm:$0xff]  }
 0x125   : > { %v2571_v17 = vpack.c.bf16 %v699_v61, %v710_v13  ;;  %v2573_v21 = vpack.c.bf16 %v701_v11, %v712_v18  ;;  %v708_v34 = vsel %vm2587_vm6, %v696_v28, 0.0  ;;  %v543_v35 = vand.u32 15, %v509_v23  ;;  %v735_v44 = vld [vmem:[#allocation2 + $0x11] sm:$0xff]  ;;  %v670_v46 = vld [vmem:[#allocation2 + $0x48] sm:$0xff]  ;;  %v740_v1 = vld [vmem:[#allocation2 + $0x39] sm:$0xff] }
 0x126   : > { %v529_v36 = vand.u32 15, %v507_v32  ;;  %v717_v37 = vpack.c.bf16 %v695_v30, %v706_v31  ;;  %v2603_v38 = vpack.c.bf16 %v697_v33, %v708_v34  ;;  %v511_v39 = vadd.s32 40, %v2543_v55  ;;  %v671_v47 = vld [vmem:[#allocation2 + $0x50] sm:$0xff]  ;;  %v741_v61 = vld [vmem:[#allocation2 + $0x41] sm:$0xff]  ;;  %v2277_v6 = vld [vmem:[%s2874_s3 + $0x38] sm:$0xff]  }
 0x127   : > { %2065 = vmatprep.mubr.msk.bf16.mxu1 %vm478_vm1, %v2571_v17  ;;  %vm2606_vm7 = vcmp.ne.s32.totalorder %v543_v35, 15  ;;  %v513_v45 = vadd.s32 56, %v2543_v55  ;;  %v734_v51 = vld [vmem:[#allocation2 + $0x9] sm:$0xff]  ;;  %v678_v53 = vpack.c.bf16 %v671_v47, %v670_v46  ;;  %v739_v58 = vld [vmem:[#allocation2 + $0x31] sm:$0xff]  ;;  %v516_v11 = vadd.s32 80, %v2543_v55  ;;  %v703_v15 = vld [vmem:[#allocation2 + $0x5f] sm:$0xff] }
 0x128   : > { %2066 = vmatmul.mubr.msk.bf16.vlgmr.msra.gmra.mrb[0].mxu1 %vm478_vm1, %v2573_v21  ;;  %2036 = vmatmul.mubr.msk.bf16.gmra.mrb[16].mxu0 %vm478_vm1, %v2567_v12  ;;  %vm2615_vm8 = vcmp.ne.s32.totalorder %v529_v36, 15  ;;  %v749_v49 = vsel %vm2606_vm7, %v737_v41, 0.0  ;;  %v557_v50 = vand.u32 15, %v511_v39  ;;  %v738_v62 = vld [vmem:[#allocation2 + $0x29] sm:$0xff]  ;;  %v743_v5 = vld [vmem:[#allocation2 + $0x51] sm:$0xff]  ;;  %v673_v19 = vld [vmem:[#allocation2 + $0x60] sm:$0xff] }
 0x129   : > { %2070 = vmatpush3.bf16.msra.mxu1 %v2272_v60  ;;  %2071 = vmatprep.mubr.msk.bf16.mxu1 %vm478_vm1, %v675_v56  ;;  %v747_v52 = vsel %vm2615_vm8, %v735_v44, 0.0  ;;  %v571_v54 = vand.u32 15, %v513_v45  ;;  %v759_v56 = vpack.c.bf16 %v749_v49, %v736_v48  ;;  %v515_v60 = vadd.s32 72, %v2543_v55  ;;  %v742_v7 = vld [vmem:[#allocation2 + $0x49] sm:$0xff]  ;;  %v702_v14 = vld [vmem:[#allocation2 + $0x57] sm:$0xff] }
 0x12a   : > { %2079 = vmatprep.subr.bf16.mxu1 %v2274_v22  ;;  %2041 = vmatprep.mubr.msk.bf16.mxu0 %vm478_vm1, %v716_v24  ;;  %vm727_vm9 = vcmp.ne.s32.totalorder %v557_v50, 15  ;;  %v758_v59 = vpack.c.bf16 %v747_v52, %v734_v51  ;;  %v592_v13 = vand.u32 15, %v516_v11  ;;  %v2682_v33 = vld [vmem:[%s2505_s26 + $0x8] sm:$0xf]  ;;  %v2688_v34 = vld [vmem:[%s2505_s26 + $0x14] sm:$0xf] }
 0x12b   : > { %vm729_vm10 = vcmp.ne.s32.totalorder %v571_v54, 15  ;;  %v751_v63 = vsel %vm727_vm9, %v739_v58, 0.0  ;;  %v585_v0 = vand.u32 15, %v515_v60  ;;  %1611 = vst.msk [vmem:[%s2500_s19] sm:$0xf] %vm1610_vm14, %v2682_v33  ;;  %v1562_v35 = vunpack.c.l.bf16 %v2682_v33 }
 0x12c   : > { %v753_v2 = vsel %vm729_vm10, %v741_v61, 0.0  ;;  %v760_v3 = vpack.c.bf16 %v751_v63, %v738_v62  ;;  %vm690_vm12 = vcmp.ne.s32.totalorder %v592_v13, 0  ;;  %1614 = vst.msk [vmem:[%s2500_s19 + $0xc] sm:$0xf] %vm1610_vm14, %v2688_v34  ;;  %v2695_v36 = vld [vmem:[%s2505_s26 + $0xc] sm:$0xf]  ;;  %v1565_v41 = vunpack.c.l.bf16 %v2688_v34 }
 0x12d   : > { %v761_v4 = vpack.c.bf16 %v753_v2, %v740_v1  ;;  %vm731_vm11 = vcmp.ne.s32.totalorder %v585_v0, 15  ;;  %v714_v16 = vsel %vm690_vm12, %v702_v14, 0.0  ;;  %1612 = vst.msk [vmem:[%s2500_s19 + $0x4] sm:$0xf] %vm1610_vm14, %v2695_v36  ;;  %v1660_v39 = vsel %vm478_vm1, %v1562_v35, 0.0 }
 0x12e   : > { %v755_v8 = vsel %vm731_vm11, %v743_v5, 0.0  ;;  %v721_v18 = vpack.c.bf16 %v703_v15, %v714_v16  ;;  %v2713_v43 = vld [vmem:[%s2505_s26 + $0x18] sm:$0xf]  ;;  %v1939_v46 = vld [vmem:[%s2875_s4] ss:$0 sm:$0xff]  ;;  %v1665_v47 = vsel %vm478_vm1, %v1565_v41, 0.0 }
 0x12f   : > { %v762_v10 = vpack.c.bf16 %v755_v8, %v742_v7  ;;  %1615 = vst.msk [vmem:[%s2500_s19 + $0x10] sm:$0xf] %vm1610_vm14, %v2713_v43  ;;  %v1566_v48 = vunpack.c.l.bf16 %v2713_v43  ;;  %v2726_v49 = vld [vmem:[%s2505_s26 + $0x1c] sm:$0xf]  ;;  %v2735_v58 = vld [vmem:[%s2505_s26 + $0x20] sm:$0xf] }
 0x130   : > { %2072 = vmatmul.mubr.msk.bf16.vlgmr.msra.gmra.mrb[4].mxu1 %vm478_vm1, %v2562_v9  ;;  %2042 = vmatmul.mubr.msk.bf16.vlgmr.msra.gmra.mrb[12].mxu0 %vm478_vm1, %v717_v37  ;;  %1616 = vst.msk [vmem:[%s2500_s19 + $0x14] sm:$0xf] %vm1610_vm14, %v2726_v49  ;;  %1617 = vst.msk [vmem:[%s2500_s19 + $0x18] sm:$0xf] %vm1610_vm14, %v2735_v58  ;;  %v1567_v1 = vunpack.c.l.bf16 %v2726_v49  ;;  %v2742_v2 = vld [vmem:[%s2505_s26 + $0x24] sm:$0xf]  ;;  %v1568_v5 = vunpack.c.l.bf16 %v2735_v58 }
 0x131   : > { %2080 = vmatpush3.bf16.msra.mxu1 %v2274_v22  ;;  %2075 = vmatprep.mubr.msk.bf16.mxu1 %vm478_vm1, %v2567_v12  ;;  %1618 = vst.msk [vmem:[%s2500_s19 + $0x1c] sm:$0xf] %vm1610_vm14, %v2742_v2  ;;  %v1569_v13 = vunpack.c.l.bf16 %v2742_v2  ;;  %vm1705_vm2 = vcmask 254080  }
 0x132   : > { %2045 = vmatprep.mubr.msk.bf16.mxu0 %vm478_vm1, %v2603_v38  ;;  %2050 = vmatpush3.bf16.msra.mxu0 %v2275_v29  ;;  %v1671_v11 = vsel %vm478_vm1, %v1568_v5, 0.0 }
 0x133   : > { %2089 = vmatprep.subr.bf16.mxu1 %v2276_v42  ;;  %2059 = vmatprep.subr.bf16.mxu0 %v2548_v57 }
 0x138   : > { %2076 = vmatmul.mubr.msk.bf16.gmra.mrb[0].mxu1 %vm478_vm1, %v678_v53  ;;  %2046 = vmatmul.mubr.msk.bf16.gmra.mrb[16].mxu0 %vm478_vm1, %v2571_v17 }
 0x139   : > { %2081 = vmatprep.mubr.msk.bf16.mxu1 %vm478_vm1, %v759_v56  ;;  %2051 = vmatprep.mubr.msk.bf16.mxu0 %vm478_vm1, %v758_v59 }
 0x140   : > { %2082 = vmatmul.mubr.msk.bf16.vlgmr.msra.gmra.mrb[4].mxu1 %vm478_vm1, %v760_v3  ;;  %2052 = vmatmul.mubr.msk.bf16.vlgmr.msra.gmra.mrb[12].mxu0 %vm478_vm1, %v759_v56  ;;  %v1667_v56 = vsel %vm478_vm1, %v1566_v48, 0.0 }
 0x141   : > { %2090 = vmatpush3.bf16.msra.mxu1 %v2276_v42  ;;  %2085 = vmatprep.mubr.msk.bf16.mxu1 %vm478_vm1, %v761_v4 }
 0x142   : > { %2055 = vmatprep.mubr.msk.bf16.mxu0 %vm478_vm1, %v760_v3  ;;  %2060 = vmatpush3.bf16.msra.mxu0 %v2548_v57  ;;  %v2278_v57 = vld [vmem:[%s2874_s3 + $0x40] sm:$0xff]  }
 0x143   : > { %2099 = vmatprep.subr.bf16.mxu1 %v2277_v6 }
 0x148   : > { %2086 = vmatmul.mubr.msk.bf16.gmra.mrb[0].mxu1 %vm478_vm1, %v762_v10  ;;  %2056 = vmatmul.mubr.msk.bf16.gmra.mrb[16].mxu0 %vm478_vm1, %v761_v4 }
 0x149   : > { %2091 = vmatprep.mubr.msk.bf16.mxu1 %vm478_vm1, %v2603_v38  ;;  %2061 = vmatprep.mubr.msk.bf16.mxu0 %vm478_vm1, %v717_v37  ;;  %v1563_v37 = vunpack.c.l.bf16 %v2695_v36 }
 0x14b   : > { %v1661_v42 = vsel %vm478_vm1, %v1563_v37, 0.0 }
 0x14c   : > { %v1662_v44 = vadd.f32 %v1661_v42, %v1660_v39 }
 0x150   : > { %2092 = vmatmul.mubr.msk.bf16.vlgmr.msra.gmra.mrb[4].mxu1 %vm478_vm1, %v2571_v17  ;;  %2062 = vmatmul.mubr.msk.bf16.vlgmr.msra.gmra.mrb[12].mxu0 %vm478_vm1, %v2603_v38  ;;  %v672_v17 = vld [vmem:[#allocation2 + $0x58] sm:$0xff] }
 0x151   : > { %2100 = vmatpush3.bf16.msra.mxu1 %v2277_v6  ;;  %2095 = vmatprep.mubr.msk.bf16.mxu1 %vm478_vm1, %v2573_v21  ;;  %v679_v20 = vpack.c.bf16 %v673_v19, %v672_v17  ;;  %v517_v21 = vadd.s32 88, %v2543_v55  ;;  %v2672_v55 = vld [vmem:[%s2505_s26 + $0x10] sm:$0xf]  ;;  %v1673_v17 = vsel %vm478_vm1, %v1569_v13, 0.0  ;;  %s1948_s26 = sshll.u32 %s2361_s25, 2  ;;  %s2899_s25 = sand.u32 1, %s2349_s22  }
 0x152   : > { %2109 = vmatprep.subr.bf16.mxu1 %v2278_v57  ;;  %1613 = vst.msk [vmem:[%s2500_s19 + $0x8] sm:$0xf] %vm1610_vm14, %v2672_v55  ;;  %v1564_v38 = vunpack.c.l.bf16 %v2672_v55  ;;  %s1730_s18 = sadd.s32 %s2357_s24, %s1948_s26  ;;  %s1717_s16 = scalar_lea.sflag [#allocation4], %s2899_s25 }
 0x153   : > { %v599_v22 = vand.u32 15, %v517_v21  ;;  %s1949_s20 = sshll.u32 %s1730_s18, 4  ;;  %s2279_s24 = scalar_lea.vmem %s2817_s1, 16 }
 0x154   : > { %v1663_v40 = vsel %vm478_vm1, %v1564_v38, 0.0  ;;  %p2280_p2 = scmp.ne.s32.totalorder %s2817_s1, %s2279_s24  ;;  %p2287_p7 = scmp.lt.s32.totalorder %s2285_s9, %s2279_s24 }
 0x155   : > { %vm733_vm13 = vcmp.ne.s32.totalorder %v599_v22, 15  ;;  %v1664_v52 = vadd.f32 %v1663_v40, %v1662_v44 }
 0x156   : > { %p2281_p4 = pnand %p2280_p2, %p2466_p3  ;;  %p2288_p9 = por %p2287_p7, %p2286_p6 }
 0x157   : > { %v1666_v62 = vadd.f32 %v1665_v47, %v1664_v52 }
 0x158   : > { %2096 = vmatmul.mubr.msk.bf16.gmra.mrb[0].mxu1 %vm478_vm1, %v721_v18  ;;  %p2282_p5 = pneg %p2281_p4 }
 0x159   : > { %2101 = vmatprep.mubr.msk.bf16.mxu1 %vm478_vm1, %v2562_v9  ;;  %v745_v9 = vld [vmem:[#allocation2 + $0x61] sm:$0xff] }
 0x15a   : > { %v757_v23 = vsel %vm733_vm13, %v745_v9, 0.0  ;;  %p2289_p10 = pnand %p2288_p9, %p2282_p5 }
 0x160   : > { %2102 = vmatmul.mubr.msk.bf16.vlgmr.msra.gmra.mrb[4].mxu1 %vm478_vm1, %v2567_v12  ;;  %v744_v12 = vld [vmem:[#allocation2 + $0x59] sm:$0xff] }
 0x161   : > { %2110 = vmatpush3.bf16.msra.mxu1 %v2278_v57  ;;  %2105 = vmatprep.mubr.msk.bf16.mxu1 %vm478_vm1, %v678_v53  ;;  %v763_v24 = vpack.c.bf16 %v757_v23, %v744_v12 }
 0x168   : > { %2106 = vmatmul.mubr.msk.bf16.gmra.mrb[0].mxu1 %vm478_vm1, %v679_v20 }
 0x169   : > { %2111 = vmatprep.mubr.msk.bf16.mxu1 %vm478_vm1, %v760_v3  ;;  %v1668_v3 = vadd.f32 %v1667_v56, %v1666_v62 }
 0x170   : > { %2112 = vmatmul.mubr.msk.bf16.vlgmr.msra.gmra.mrb[4].mxu1 %vm478_vm1, %v761_v4  ;;  %v1669_v4 = vsel %vm478_vm1, %v1567_v1, 0.0 }
 0x171   : > { %2115 = vmatprep.mubr.msk.bf16.mxu1 %vm478_vm1, %v762_v10  ;;  %v1670_v7 = vadd.f32 %v1669_v4, %v1668_v3 }
 0x173   : > { %v1672_v15 = vadd.f32 %v1671_v11, %v1670_v7 }
 0x175   : > { %v1674_v21 = vadd.f32 %v1673_v17, %v1672_v15 }
 0x177   : > { %v1675_v12 = vrot.slane %v1674_v21, 4 }
 0x178   : > { %2116 = vmatmul.mubr.msk.bf16.gmra.mrb[0].mxu1 %vm478_vm1, %v763_v24  ;;  %vm1683_vm1 = vcmask 261248  }
 0x179   : > { %v1676_v24 = vadd.f32 %v1675_v12, %v1674_v21 }
 0x21b   : > { %v2057_v25 = vpop.f32.mrb[16].mxu0 }
 0x21c   : > { %v1006_v26 = vpop.f32.mrb[17].mxu0 }
 0x21d   : > { %v2677_v27 = vpop.f32.mrb[18].mxu0 }
 0x21e   : > { %v2679_v28 = vpop.f32.mrb[19].mxu0 }
 0x223   : > { %v2063_v29 = vpop.f32.mrb[12].mxu0 }
 0x224   : > { %v1075_v30 = vpop.f32.mrb[13].mxu0 }
 0x225   : > { %v2064_v31 = vpop.f32.mrb[14].mxu0 }
 0x226   : > { %v1078_v32 = vpop.f32.mrb[15].mxu0 }
 0x243   : > { %v2113_v45 = vpop.f32.mrb[4].mxu1 }
 0x244   : > { %v2121_v50 = vadd.f32 %v2113_v45, %v2063_v29  ;;  %v1500_v51 = vpop.f32.mrb[5].mxu1 }
 0x245   : > { %v2122_v53 = vadd.f32 %v1500_v51, %v1075_v30  ;;  %v2114_v54 = vpop.f32.mrb[6].mxu1 }
 0x246   : > { %v2123_v59 = vadd.f32 %v2114_v54, %v2064_v31  ;;  %v1503_v60 = vpop.f32.mrb[7].mxu1  ;;  %v1548_v61 = vadd.f32 %v2121_v50, %v1939_v46 }
 0x247   : > { %v2124_v63 = vadd.f32 %v1503_v60, %v1078_v32  ;;  %v1546_v0 = vadd.f32 %v2122_v53, %v1939_v46 }
 0x248   : > { %1582 = vrot.lane.b32.xlu1 %v1548_v61, %s2378_s17  ;;  %v1549_v6 = vadd.f32 %v2123_v59, %v1939_v46 }
 0x249   : > { %1578 = vrot.lane.b32.xlu0 %v1546_v0, %s2378_s17  ;;  %v1547_v8 = vadd.f32 %v2124_v63, %v1939_v46 }
 0x24b   : > { %v2117_v10 = vpop.f32.mrb[0].mxu1 }
 0x24c   : > { %v2125_v14 = vadd.f32 %v2117_v10, %v2057_v25  ;;  %v1516_v57 = vpop.f32.mrb[1].mxu1  ;;  %1584 = vrot.lane.b32.xlu1 %v1549_v6, %s2378_s17 }
 0x24d   : > { %v2126_v16 = vadd.f32 %v1516_v57, %v1006_v26  ;;  %v2118_v18 = vpop.f32.mrb[2].mxu1  ;;  %1580 = vrot.lane.b32.xlu0 %v1547_v8, %s2378_s17  ;;  %v1677_v26 = vrot.slane %v1676_v24, 2 }
 0x24e   : > { %v2127_v19 = vadd.f32 %v2118_v18, %v2677_v27  ;;  %v1519_v20 = vpop.f32.mrb[3].mxu1  ;;  %v1552_v25 = vadd.f32 %v2125_v14, %v1939_v46 }
 0x24f   : > { %v1550_v22 = vadd.f32 %v2126_v16, %v1939_v46  ;;  %v2128_v9 = vadd.f32 %v1519_v20, %v2679_v28  ;;  %v1678_v27 = vadd.f32 %v1677_v26, %v1676_v24 }
 0x250   : > { %v1553_v29 = vadd.f32 %v2127_v19, %v1939_v46 }
 0x251   : > { %v1551_v23 = vadd.f32 %v2128_v9, %v1939_v46  ;;  %1586 = vrot.lane.b32.xlu0 %v1550_v22, %s2378_s17  ;;  %v1679_v30 = vrot.slane %v1678_v27, 1 }
 0x253   : > { %1588 = vrot.lane.b32.xlu1 %v1551_v23, %s2378_s17  ;;  %v1680_v28 = vadd.f32 %v1679_v30, %v1678_v27 }
 0x255   : > { %1590 = vrot.lane.b32.xlu0 %v1552_v25, %s2378_s17  ;;  %1682 = vst.msk [vmem:[%s2532_s8] sm:$0x1] %vm1681_vm15, %v1680_v28 }
 0x257   : > { %1592 = vrot.lane.b32.xlu1 %v1553_v29, %s2378_s17 }
 0x2ba   : > { %v1583_v31 = vpop.permute.xlu1 %1582 }
 0x2bb   : > { %v1604_v32 = vadd.f32 %v1583_v31, %v1564_v38  ;;  %v1579_v39 = vpop.permute.xlu0 %1578 }
 0x2bc   : > { %v1602_v40 = vadd.f32 %v1579_v39, %v1562_v35 }
 0x2bd   : > { %v1954_v42 = vpack.c.bf16 %v1604_v32, %v1604_v32  ;;  %v1687_v34 = vsel %vm1683_vm1, %v1604_v32, 0.0 }
 0x2be   : > { %v1952_v44 = vpack.c.bf16 %v1602_v40, %v1602_v40  ;;  %v1585_v45 = vpop.permute.xlu1 %1584  ;;  %v1684_v33 = vsel %vm1683_vm1, %v1602_v40, 0.0 }
 0x2bf   : > { %1654 = vst.msk [vmem:[%s2500_s19 + $0x8] sm:$0xf] %vm1651_vm0, %v1954_v42  ;;  %v1605_v46 = vadd.f32 %v1585_v45, %v1565_v41  ;;  %v1581_v47 = vpop.permute.xlu0 %1580 }
 0x2c0   : > { %1652 = vst.msk [vmem:[%s2500_s19] sm:$0xf] %vm1651_vm0, %v1952_v44  ;;  %v1603_v55 = vadd.f32 %v1581_v47, %v1563_v37 }
 0x2c1   : > { %v1955_v38 = vpack.c.bf16 %v1605_v46, %v1605_v46  ;;  %v1689_v53 = vsel %vm1683_vm1, %v1605_v46, 0.0 }
 0x2c2   : > { %v1953_v35 = vpack.c.bf16 %v1603_v55, %v1603_v55  ;;  %v1685_v50 = vsel %vm1683_vm1, %v1603_v55, 0.0 }
 0x2c3   : > { %1655 = vst.msk [vmem:[%s2500_s19 + $0xc] sm:$0xf] %vm1651_vm0, %v1955_v38  ;;  %v1686_v51 = vadd.f32 %v1685_v50, %v1684_v33  ;;  %v1587_v52 = vpop.permute.xlu0 %1586 }
 0x2c4   : > { %1653 = vst.msk [vmem:[%s2500_s19 + $0x4] sm:$0xf] %vm1651_vm0, %v1953_v35  ;;  %v1606_v36 = vadd.f32 %v1587_v52, %v1566_v48 }
 0x2c5   : > { %v1688_v37 = vadd.f32 %v1687_v34, %v1686_v51  ;;  %v1589_v41 = vpop.permute.xlu1 %1588 }
 0x2c6   : > { %v1956_v54 = vpack.c.bf16 %v1606_v36, %v1606_v36  ;;  %v1607_v56 = vadd.f32 %v1589_v41, %v1567_v1  ;;  %v1691_v61 = vsel %vm1683_vm1, %v1606_v36, 0.0 }
 0x2c7   : > { %v1690_v59 = vadd.f32 %v1689_v53, %v1688_v37  ;;  %v1591_v60 = vpop.permute.xlu0 %1590 }
 0x2c8   : > { %1656 = vst.msk [vmem:[%s2500_s19 + $0x10] sm:$0xf] %vm1651_vm0, %v1956_v54  ;;  %v1957_v62 = vpack.c.bf16 %v1607_v56, %v1607_v56  ;;  %v1608_v43 = vadd.f32 %v1591_v60, %v1568_v5  ;;  %v1693_v49 = vsel %vm1683_vm1, %v1607_v56, 0.0 }
 0x2c9   : > { %v1692_v48 = vadd.f32 %v1691_v61, %v1690_v59  ;;  %v1593_v63 = vpop.permute.xlu1 %1592 }
 0x2ca   : > { %1657 = vst.msk [vmem:[%s2500_s19 + $0x14] sm:$0xf] %vm1651_vm0, %v1957_v62  ;;  %v1958_v0 = vpack.c.bf16 %v1608_v43, %v1608_v43  ;;  %v1609_v1 = vadd.f32 %v1593_v63, %v1569_v13  ;;  %v1695_v4 = vsel %vm1683_vm1, %v1608_v43, 0.0 }
 0x2cb   : > { %v1694_v3 = vadd.f32 %v1693_v49, %v1692_v48 }
 0x2cc   : > { %1658 = vst.msk [vmem:[%s2500_s19 + $0x18] sm:$0xf] %vm1651_vm0, %v1958_v0  ;;  %v1959_v58 = vpack.c.bf16 %v1609_v1, %v1609_v1  ;;  %v1697_v6 = vsel %vm1683_vm1, %v1609_v1, 0.0 }
 0x2cd   : > { %v1696_v5 = vadd.f32 %v1695_v4, %v1694_v3 }
 0x2ce   : > { %1659 = vst.msk [vmem:[%s2500_s19 + $0x1c] sm:$0xf] %vm1651_vm0, %v1959_v58  ;;  %s2815_s19 = scalar_lea.hbm %s2877_s6, %s1949_s20 }
 0x2cf   : > { %v1698_v7 = vadd.f32 %v1697_v6, %v1696_v5 }
 0x2d1   : > { %v1699_v8 = vrot.slane %v1698_v7, 4 }
 0x2d3   : > { %v1700_v2 = vadd.f32 %v1699_v8, %v1698_v7 }
 0x2d5   : > { %v1701_v10 = vrot.slane %v1700_v2, 2 }
 0x2d7   : > { %v1702_v11 = vadd.f32 %v1701_v10, %v1700_v2 }
 0x2d9   : > { %v1703_v13 = vrot.slane %v1702_v11, 1 }
 0x2db   : > { %v1704_v14 = vadd.f32 %v1703_v13, %v1702_v11 }
 0x2dd   : > { %1706 = vst.msk [vmem:[%s2532_s8] sm:$0x1] %vm1705_vm2, %v1704_v14 }
 0x2de   : > { %2292 = shalt.err (!%p2289_p10)
}
 0x2df   : > { %s2293_s8 = scalar_lea.hbm %s2815_s19, 16  ;;  %s2297_s14 = scalar_lea.hbm %s2877_s6, 128 }
 0x2e0   : > { %p2294_p11 = scmp.ne.s32.totalorder %s2815_s19, %s2293_s8  ;;  %p2298_p0 = scmp.lt.u32.totalorder %s2815_s19, %s2877_s6 }
 0x2e1   : > { %p2299_p1 = scmp.lt.u32.totalorder %s2297_s14, %s2293_s8  ;;  %p2301_p4 = scmp.lt.u32.totalorder %s2293_s8, %s2815_s19 }
 0x2e2   : > { %p2295_p12 = pnand %p2294_p11, %p2466_p3 }
 0x2e3   : > { %p2300_p2 = por %p2299_p1, %p2298_p0 }
 0x2e4   : > { %p2296_p13 = pneg %p2295_p12 }
 0x2e5   : > { %p2302_p5 = por %p2301_p4, %p2300_p2 }
 0x2e7   : > { %p2303_p6 = pnand %p2302_p5, %p2296_p13 }
 0x2e9   : > { %2306 = shalt.err (!%p2303_p6)
}
 0x2ea   : > { %2187 = dma.vmem_to_hbm [thread:$0]  (%p2466_p3), %s2817_s1, 16, %s2815_s19, %s1717_s16  }
 0x2eb PF: > { %p2193_p7 = scmp.ge.s32.totalorder %s2373_s28, 2  ;;  %s1758_s18 = sand.u32 1, %s2345_s21  }
 0x2ec   : > { %s1759_s20 = scalar_lea.sflag [#allocation4], %s1758_s18 }
 0x2ed   : > { %p2190_p9 = pnand %p2193_p7, %p2475_p8 }
 0x2ef   : > { %2340 = dma.done.wait (!%p2190_p9), %s1759_s20, 16  }
 0x2f0   : > { %2342 = vsyncadd (!%p2190_p9), %s1759_s20, 4294967280  ;;  %s20_s28 = sadd.s32 1, %s2373_s28   ;;  %s2900_s24 = sld [smem:[#allocation6_spill]] }
 0x2f1   : > { %p17_p10 = scmp.ge.s32.totalorder %s20_s28, 10   ;;  %s2901_s25 = sld [smem:[#allocation7_spill]] }
 0x2f2   : > { %s2902_s26 = sld [smem:[#allocation8_spill]]  ;;  %s2903_s27 = sld [smem:[#allocation9_spill]] }
 0x2f3   : > { %s2904_s21 = smov %s2349_s22  ;;  %s2905_s22 = smov %s2353_s23 }
 0x2f4   : > { %s2906_s23 = smov %s2484_s15  ;;  %19 = sbr.rel (!%p17_p10) target bundleno = 7 (0x7), region = 103 }
 0x2fb   :  { %1763 = vsyncpa [#allocation4], 1 }
 0x2fc   :  { %1765 = vsyncpa [#allocation4 + $0x1], 1 }

</bundles_post_ra>
